<compile_context>
chip_gen: v5e
topology: v5e:2x2
jax: 0.10.0
libtpu: 0.0.40
codegen_flags: <defaults>
</compile_context>

<pallas_src>
import functools

import jax
import jax.numpy as jnp
from jax import lax
from jax.experimental import pallas as pl
from jax.experimental.pallas import tpu as pltpu

LANES = 128
SUBLANES = 8
ROW_ALIGN = 16          # bf16-safe sublane alignment (16,128) — also fine for f32
MAX_TILE_ROWS = 4096    # 4096x128 f32 block = 2 MiB; 2 inputs x 2 bufs + acc ~ 10 MiB VMEM


def _bce_sum_kernel(x_ref, y_ref, o_ref, acc_ref, *, total_count):
    s = pl.program_id(0)            # core split (parallel)
    t = pl.program_id(1)            # tile within split (reduction)
    nt = pl.num_programs(1)
    tile_rows = acc_ref.shape[0]

    @pl.when(t == 0)
    def _():
        acc_ref[...] = jnp.zeros_like(acc_ref)

    x = x_ref[...].astype(jnp.float32)
    y = y_ref[...].astype(jnp.float32)

    # Numerically stable BCE-with-logits (identical to torch):
    #   loss = max(x, 0) - x * y + log(1 + exp(-|x|))
    loss = jnp.maximum(x, 0.0) - x * y + jnp.log1p(jnp.exp(-jnp.abs(x)))

    # In-kernel validity mask: kills both the (<=2047-elem) tail padding and any
    # garbage rows of a ragged trailing block.  Pure VPU work — free here.
    # TODO(synk): flat index is int32; inputs > 2^31 elements would need int64 math.
    tile_idx = s * nt + t
    row = lax.broadcasted_iota(jnp.int32, (tile_rows, LANES), 0) + tile_idx * tile_rows
    lane = lax.broadcasted_iota(jnp.int32, (tile_rows, LANES), 1)
    valid = row * LANES + lane < total_count

    acc_ref[...] += jnp.where(valid, loss, 0.0)

    @pl.when(t == nt - 1)
    def _():
        # Collapse the full-tile accumulator to one (8,128) lane-dense partial
        # sum per split; the final cross-lane reduce + mean is done in JAX.
        a = acc_ref[...]
        o_ref[...] = jnp.sum(a.reshape(tile_rows // SUBLANES, SUBLANES, LANES), axis=0)


@jax.jit
def bce_with_logits_loss(img_pred, label):
    """Mean BCEWithLogitsLoss over all elements (matches nn.BCEWithLogitsLoss())."""
    assert img_pred.shape == label.shape
    total = img_pred.size

    # Flatten (free) and keep the original dtype; cast happens in-kernel.
    xf = img_pred.reshape(-1)
    yf = label.reshape(-1)

    # Pad only up to one (16,128) tile so the reshape below is legal; skipped
    # entirely when total is already aligned (the common NCHW case).
    chunk = ROW_ALIGN * LANES
    padded = pl.cdiv(total, chunk) * chunk
    if padded != total:
        xf = jnp.pad(xf, (0, padded - total))
        yf = jnp.pad(yf, (0, padded - total))

    rows = padded // LANES                      # multiple of 16
    x2 = xf.reshape(rows, LANES)
    y2 = yf.reshape(rows, LANES)

    tile_rows = min(rows, MAX_TILE_ROWS)        # multiple of 16 either way
    num_tiles = pl.cdiv(rows, tile_rows)

    # Split tiles across TensorCores (v7x has 2 TCs; harmless on v5e/v6e).
    num_splits = 2 if (num_tiles >= 2 and num_tiles % 2 == 0) else 1
    tiles_per_split = num_tiles // num_splits

    kernel = functools.partial(_bce_sum_kernel, total_count=total)

    partials = pl.pallas_call(
        kernel,
        out_shape=jax.ShapeDtypeStruct((num_splits * SUBLANES, LANES), jnp.float32),
        grid_spec=pltpu.PrefetchScalarGridSpec(
            num_scalar_prefetch=0,
            grid=(num_splits, tiles_per_split),
            in_specs=[
                pl.BlockSpec((tile_rows, LANES),
                             lambda s, t: (s * tiles_per_split + t, 0)),
                pl.BlockSpec((tile_rows, LANES),
                             lambda s, t: (s * tiles_per_split + t, 0)),
            ],
            out_specs=pl.BlockSpec((SUBLANES, LANES), lambda s, t: (s, 0)),
            scratch_shapes=[pltpu.VMEM((tile_rows, LANES), jnp.float32)],
        ),
        compiler_params=pltpu.CompilerParams(
            dimension_semantics=("parallel", "arbitrary"),
        ),
    )(x2, y2)

    return jnp.sum(partials) / jnp.float32(total)


class BCELoss:
    """Pallas equivalent of the mmseg BCELoss module (no learnable params).

    Note: like the PyTorch module, this wraps BCEWithLogitsLoss — it expects
    raw logits, not sigmoid probabilities.
    """

    def __init__(self, class_weighted=False):
        del class_weighted  # unused, matches the PyTorch module

    def __call__(self, img_pred, label, **kwargs):
        return bce_with_logits_loss(img_pred, label)


if __name__ == "__main__":
    key = jax.random.PRNGKey(0)
    k1, k2 = jax.random.split(key)

    # NCHW logits and soft labels in [0, 1], same shape (as BCEWithLogitsLoss expects)
    x = jax.random.normal(k1, (2, 4, 16, 16), dtype=jnp.float32)
    y = jax.random.uniform(k2, (2, 4, 16, 16), dtype=jnp.float32)

    loss_fn = BCELoss()
    loss = loss_fn(x, y)
    jax.block_until_ready(loss)

    # reference check in plain JAX
    ref = jnp.mean(jnp.maximum(x, 0.0) - x * y + jnp.log1p(jnp.exp(-jnp.abs(x))))
    assert jnp.allclose(loss, ref, atol=1e-5, rtol=1e-5), (loss, ref)

    print("KERNEL_OK")
</pallas_src>

<mosaic_0001>
module attributes {stable_mosaic.version = 11 : i64} {
  func.func @_bce_sum_kernel(%arg0: i32, %arg1: i32, %arg2: memref<16x128xf32, #tpu.memory_space<vmem>>, %arg3: memref<16x128xf32, #tpu.memory_space<vmem>>, %arg4: memref<8x128xf32, #tpu.memory_space<vmem>>, %arg5: memref<16x128xf32, #tpu.memory_space<vmem>>) attributes {dimension_semantics = [#tpu.dimension_semantics<parallel>, #tpu.dimension_semantics<arbitrary>], iteration_bounds = array<i64: 1, 1>, scalar_prefetch = 0 : i64, scratch_operands = 1 : i64, tpu.core_type = #tpu.core_type<tc>, window_params = [{transform_indices = @transform_0, window_bounds = array<i64: 16, 128>}, {transform_indices = @transform_1, window_bounds = array<i64: 16, 128>}, {transform_indices = @transform_2, window_bounds = array<i64: 8, 128>}]} {
    %c0_i32 = arith.constant 0 : i32
    %0 = arith.cmpi eq, %arg1, %c0_i32 : i32
    %1 = arith.extui %0 : i1 to i32
    %c0_i32_0 = arith.constant 0 : i32
    %2 = arith.cmpi ne, %1, %c0_i32_0 : i32
    scf.if %2 {
      %cst_12 = arith.constant 0.000000e+00 : f32
      %35 = vector.broadcast %cst_12 : f32 to vector<16x128xf32>
      %c0_13 = arith.constant 0 : index
      %c0_14 = arith.constant 0 : index
      %36 = vector.load %arg5[%c0_13, %c0_14] : memref<16x128xf32, #tpu.memory_space<vmem>>, vector<16x128xf32>
      tpu.vector_store %arg5[%c0_13, %c0_14], %35 {strides = array<i32>} : memref<16x128xf32, #tpu.memory_space<vmem>>, vector<16x128xf32>,
    } else {
    }
    %c0 = arith.constant 0 : index
    %c0_1 = arith.constant 0 : index
    %3 = vector.load %arg2[%c0, %c0_1] : memref<16x128xf32, #tpu.memory_space<vmem>>, vector<16x128xf32>
    %c0_2 = arith.constant 0 : index
    %c0_3 = arith.constant 0 : index
    %4 = vector.load %arg3[%c0_2, %c0_3] : memref<16x128xf32, #tpu.memory_space<vmem>>, vector<16x128xf32>
    %cst = arith.constant 0.000000e+00 : f32
    %5 = vector.broadcast %cst : f32 to vector<16x128xf32>
    %6 = arith.maximumf %3, %5 : vector<16x128xf32>
    %7 = arith.mulf %3, %4 : vector<16x128xf32>
    %8 = arith.subf %6, %7 : vector<16x128xf32>
    %9 = math.absf %3 : vector<16x128xf32>
    %cst_4 = arith.constant 0.000000e+00 : f32
    %10 = vector.broadcast %cst_4 : f32 to vector<16x128xf32>
    %11 = arith.subf %10, %9 : vector<16x128xf32>
    %12 = math.exp %11 : vector<16x128xf32>
    %13 = math.log1p %12 : vector<16x128xf32>
    %14 = arith.addf %8, %13 : vector<16x128xf32>
    %c1_i32 = arith.constant 1 : i32
    %15 = arith.muli %arg0, %c1_i32 : i32
    %16 = arith.addi %15, %arg1 : i32
    %17 = tpu.iota {dimensions = array<i32: 0>} : vector<16x128xi32>
    %c16_i32 = arith.constant 16 : i32
    %18 = arith.muli %16, %c16_i32 : i32
    %19 = vector.broadcast %18 : i32 to vector<16x128xi32>
    %20 = arith.addi %17, %19 : vector<16x128xi32>
    %21 = tpu.iota {dimensions = array<i32: 1>} : vector<16x128xi32>
    %c128_i32 = arith.constant 128 : i32
    %22 = vector.broadcast %c128_i32 : i32 to vector<16x128xi32>
    %23 = arith.muli %20, %22 : vector<16x128xi32>
    %24 = arith.addi %23, %21 : vector<16x128xi32>
    %c2048_i32 = arith.constant 2048 : i32
    %25 = vector.broadcast %c2048_i32 : i32 to vector<16x128xi32>
    %26 = arith.cmpi slt, %24, %25 : vector<16x128xi32>
    %c0_5 = arith.constant 0 : index
    %c0_6 = arith.constant 0 : index
    %27 = vector.load %arg5[%c0_5, %c0_6] : memref<16x128xf32, #tpu.memory_space<vmem>>, vector<16x128xf32>
    %cst_7 = arith.constant 0.000000e+00 : f32
    %28 = vector.broadcast %cst_7 : f32 to vector<16x128xf32>
    %29 = arith.select %26, %14, %28 : vector<16x128xi1>, vector<16x128xf32>
    %30 = arith.addf %27, %29 : vector<16x128xf32>
    %c0_8 = arith.constant 0 : index
    %c0_9 = arith.constant 0 : index
    %31 = vector.load %arg5[%c0_8, %c0_9] : memref<16x128xf32, #tpu.memory_space<vmem>>, vector<16x128xf32>
    tpu.vector_store %arg5[%c0_8, %c0_9], %30 {strides = array<i32>} : memref<16x128xf32, #tpu.memory_space<vmem>>, vector<16x128xf32>,
    %c0_i32_10 = arith.constant 0 : i32
    %32 = arith.cmpi eq, %arg1, %c0_i32_10 : i32
    %33 = arith.extui %32 : i1 to i32
    %c0_i32_11 = arith.constant 0 : i32
    %34 = arith.cmpi ne, %33, %c0_i32_11 : i32
    scf.if %34 {
      %c0_12 = arith.constant 0 : index
      %c0_13 = arith.constant 0 : index
      %35 = vector.load %arg5[%c0_12, %c0_13] : memref<16x128xf32, #tpu.memory_space<vmem>>, vector<16x128xf32>
      %36 = vector.shape_cast %35 : vector<16x128xf32> to vector<2x8x128xf32>
      %cst_14 = arith.constant dense<0.000000e+00> : vector<8x128xf32>
      %37 = vector.multi_reduction <add>, %36, %cst_14 [0] : vector<2x8x128xf32> to vector<8x128xf32>
      %c0_15 = arith.constant 0 : index
      %c0_16 = arith.constant 0 : index
      %38 = vector.load %arg4[%c0_15, %c0_16] : memref<8x128xf32, #tpu.memory_space<vmem>>, vector<8x128xf32>
      tpu.vector_store %arg4[%c0_15, %c0_16], %37 {strides = array<i32>} : memref<8x128xf32, #tpu.memory_space<vmem>>, vector<8x128xf32>,
    } else {
    }
    return
  }
  func.func @transform_0(%arg0: i32, %arg1: i32) -> (i32, i32) {
    %c1_i32 = arith.constant 1 : i32
    %0 = arith.muli %arg0, %c1_i32 : i32
    %1 = arith.addi %0, %arg1 : i32
    %c0_i32 = arith.constant 0 : i32
    %c0_i32_0 = arith.constant 0 : i32
    return %1, %c0_i32 : i32, i32
  }
  func.func @transform_1(%arg0: i32, %arg1: i32) -> (i32, i32) {
    %c1_i32 = arith.constant 1 : i32
    %0 = arith.muli %arg0, %c1_i32 : i32
    %1 = arith.addi %0, %arg1 : i32
    %c0_i32 = arith.constant 0 : i32
    %c0_i32_0 = arith.constant 0 : i32
    return %1, %c0_i32 : i32, i32
  }
  func.func @transform_2(%arg0: i32, %arg1: i32) -> (i32, i32) {
    %c0_i32 = arith.constant 0 : i32
    %c0_i32_0 = arith.constant 0 : i32
    return %arg0, %c0_i32 : i32, i32
  }
}

</mosaic_0001>

<bundles_post_ra>
// kernel: bce_with_logits_loss.1
= control target key start
LH: loop header
LB: loop body
LE: loop exit
PB: predicated region body
PF: predicated region fallthrough
CT: control target
= control target key end

     0   :  { %v100_v8 = vlaneseq  ;;  %s184_s0 = inlined_call_operand.vmem [shape: f32[16,128], index: 0, kind: input, shape index: {}]   ;;  %s185_s1 = inlined_call_operand.vmem [shape: f32[16,128], index: 1, kind: input, shape index: {}]   ;;  %s186_s2 = inlined_call_operand.vmem [shape: f32[8,128], index: 2, kind: output, shape index: {}]  }
   0x1   :  { %v61_v0 = vld [vmem:[%s184_s0] sm:$0xff]  ;;  %v62_v1 = vld [vmem:[%s184_s0 + $0x8] sm:$0xff] }
   0x2   :  { %v71_v2 = vand.u32 2147483647, %v61_v0  ;;  %v72_v3 = vand.u32 2147483647, %v62_v1  ;;  %v101_v9 = vshrl.u32 %v100_v8, 7  ;;  %v63_v15 = vld [vmem:[%s185_s1] sm:$0xff] }
   0x3   :  { %v64_v18 = vld [vmem:[%s185_s1 + $0x8] sm:$0xff]  ;;  %v65_v19 = vmax.f32 %v61_v0, 0.0  ;;  %v108_v21 = vand.u32 127, %v100_v8  ;;  %v67_v23 = vmul.f32 %v63_v15, %v61_v0  ;;  %v66_v27 = vmax.f32 %v62_v1, 0.0 }
   0x4   :  { %v73_v4 = vsub.f32 0.0, %v71_v2  ;;  %v74_v5 = vsub.f32 0.0, %v72_v3  ;;  %v102_v14 = vadd.s32 8, %v101_v9  ;;  %v109_v22 = vmul.u32 128, %v101_v9 }
   0x5   :  { %v68_v28 = vmul.f32 %v64_v18, %v62_v1  ;;  %v69_v33 = vsub.f32 %v65_v19, %v67_v23 }
   0x6   :  { %v75_v6 = vmul.f32 1.442695, %v73_v4  ;;  %v77_v7 = vmul.f32 1.442695, %v74_v5  ;;  %v110_v26 = vmul.u32 128, %v102_v14  ;;  %v111_v31 = vadd.s32 %v109_v22, %v108_v21 }
   0x7   :  { %v70_v37 = vsub.f32 %v66_v27, %v68_v28 }
   0x8   :  { %146 = vpow2.f32 %v75_v6  ;;  %v112_v35 = vadd.s32 %v110_v26, %v108_v21  ;;  %vm113_vm2 = vcmp.lt.s32.totalorder %v111_v31, 2048 }
   0x9   :  { %148 = vpow2.f32 %v77_v7 }
   0xa   :  { %vm114_vm3 = vcmp.lt.s32.totalorder %v112_v35, 2048 }
   0xe   :  { %v147_v10 = vpop.eup %146 }
   0xf   :  { %v149_v11 = vpop.eup %148  ;;  %v79_v12 = vadd.f32 1.0, %v147_v10  ;;  %v82_v13 = vmul.f32 -0.5, %v147_v10  ;;  %v85_v24 = vand.u32 2147483647, %v147_v10 }
  0x10   :  { %v88_v16 = vadd.f32 1.0, %v149_v11  ;;  %v91_v17 = vmul.f32 -0.5, %v149_v11  ;;  %v94_v29 = vand.u32 2147483647, %v149_v11 }
  0x11   :  { %150 = vlog2.f32 %v79_v12  ;;  %v83_v20 = vadd.f32 1.0, %v82_v13  ;;  %vm86_vm0 = vcmp.lt.f32.partialorder %v85_v24, 0.0004427343 }
  0x12   :  { %152 = vlog2.f32 %v88_v16  ;;  %v92_v25 = vadd.f32 1.0, %v91_v17  ;;  %vm95_vm1 = vcmp.lt.f32.partialorder %v94_v29, 0.0004427343 }
  0x13   :  { %v84_v30 = vmul.f32 %v147_v10, %v83_v20 }
  0x14   :  { %v93_v34 = vmul.f32 %v149_v11, %v92_v25 }
  0x17   :  { %v151_v32 = vpop.eup %150 }
  0x18   :  { %v153_v36 = vpop.eup %152  ;;  %v81_v38 = vmul.f32 0.6931472, %v151_v32 }
  0x19   :  { %v90_v39 = vmul.f32 0.6931472, %v153_v36 }
  0x1a   :  { %v87_v40 = vsel %vm86_vm0, %v84_v30, %v81_v38 }
  0x1b   :  { %v96_v41 = vsel %vm95_vm1, %v93_v34, %v90_v39  ;;  %v97_v42 = vadd.f32 %v87_v40, %v69_v33 }
  0x1c   :  { %v98_v43 = vadd.f32 %v96_v41, %v70_v37 }
  0x1d   :  { %v117_v44 = vsel %vm113_vm2, %v97_v42, 0.0 }
  0x1e   :  { %v118_v45 = vsel %vm114_vm3, %v98_v43, 0.0 }
  0x1f   :  { %v128_v46 = vadd.f32 %v118_v45, %v117_v44 }
  0x21   :  { %129 = vst [vmem:[%s186_s2] sm:$0xff] %v128_v46 }

</bundles_post_ra>
